<compile_context>
chip_gen: v6e
topology: v6e:2x2x1
jax: 0.10.0
libtpu: 0.0.40
codegen_flags: <defaults>
</compile_context>

<pallas_src>
import functools

import jax
import jax.numpy as jnp
from jax.experimental import pallas as pl
from jax.experimental.pallas import tpu as pltpu


def _round_up(x: int, m: int) -> int:
    return ((x + m - 1) // m) * m


def _vmem_capacity_bytes() -> int:
    """Per-core VMEM capacity with a conservative fallback (v7x per-TC)."""
    try:
        info = pltpu.get_tpu_info()
        cap = int(getattr(info, "vmem_capacity_bytes", 0) or 0)
        if cap > 0:
            return cap
    except Exception:
        pass
    return 64 * 1024 * 1024


def _plan_tiles(num_nodes: int, num_msgs: int, msg_dim: int, vmem_budget: int):
    """Pick (tn, tm, d_pad).  Prefer keeping all messages resident (tm=m_pad)
    so the message block is DMA'd from HBM exactly once for the whole grid."""
    d_pad = _round_up(max(msg_dim, 1), 128)
    m_full = _round_up(max(num_msgs, 1), 128)

    def footprint(tn, tm):
        msg_b = 2 * tm * d_pad * 4      # double-buffered message input
        ids_b = 2 * tm * 4              # ids input (tiny)
        out_b = 2 * tn * d_pad * 4      # resident output block (buffered)
        inter = 2 * tn * tm * 4         # onehot / select intermediates
        return msg_b + ids_b + out_b + inter + tn * 4

    tn = min(256, _round_up(num_nodes, 8))

    if footprint(tn, m_full) <= vmem_budget:
        tm = m_full                     # single M block: messages resident
    else:
        tm = 128
        for cand in (2048, 1024, 512, 256, 128):
            if cand <= m_full and footprint(tn, cand) <= vmem_budget:
                tm = cand
                break
        # Messages are re-streamed once per N pass -> use fewer, larger N tiles.
        for cand in (2048, 1024, 512):
            cand_tn = min(cand, _round_up(num_nodes, 8))
            if cand_tn > tn and footprint(cand_tn, tm) <= vmem_budget:
                tn = cand_tn
                break

    return tn, tm, d_pad


def _make_agg_kernel(tn: int, tm: int, agg_method: str):
    """Kernel body for one (N-tile, M-tile) grid point.

    Args: tile_cnt_ref (SMEM, scalar prefetch, flat [n_tiles*m_tiles]),
    ids_ref [1, tm] i32, msg_ref [tm, d_pad] f32, out_ref [tn, d_pad] f32
    (resident accumulator), optional cnt_ref [tn, 1] f32 VMEM scratch (mean).
    """

    def kernel(tile_cnt_ref, ids_ref, msg_ref, out_ref, *scratch):
        n = pl.program_id(0)
        m = pl.program_id(1)
        num_m = pl.num_programs(1)
        nonempty = tile_cnt_ref[n * num_m + m] > 0
        cnt_ref = scratch[0] if scratch else None

        @pl.when(m == 0)
        def _init():
            out_ref[...] = jnp.zeros_like(out_ref)
            if cnt_ref is not None:
                cnt_ref[...] = jnp.zeros_like(cnt_ref)

        # Skip the onehot build + matmul entirely if no message in this block
        # maps to this N-tile (per-(n,m) histogram prefetched into SMEM).
        @pl.when(nonempty)
        def _compute():
            ids = ids_ref[...]                                    # [1, tm] i32
            msg = msg_ref[...]                                    # [tm, d_pad]
            node_iota = n * tn + jax.lax.broadcasted_iota(
                jnp.int32, (tn, tm), 0)
            match = ids == node_iota                              # [tn, tm]

            if agg_method == "mean":
                onehot = match.astype(jnp.float32)
                out_ref[...] += jnp.dot(
                    onehot, msg, preferred_element_type=jnp.float32)
                # XLU lane-reduce; overlaps the MXU matmul.
                cnt_ref[...] += jnp.sum(onehot, axis=1, keepdims=True)
            else:  # 'last' — block-local last match; later M-tiles overwrite.
                pos = jax.lax.broadcasted_iota(jnp.int32, (tn, tm), 1)
                last_pos = jnp.max(jnp.where(match, pos, -1),
                                   axis=1, keepdims=True)         # [tn, 1]
                sel = jnp.logical_and(pos == last_pos, match)
                blk = jnp.dot(sel.astype(jnp.float32), msg,
                              preferred_element_type=jnp.float32)
                has = last_pos >= 0                               # [tn, 1]
                out_ref[...] = jnp.where(has, blk, out_ref[...])

        if agg_method == "mean":
            @pl.when(m == num_m - 1)
            def _finalize():
                inv = pl.reciprocal(jnp.maximum(cnt_ref[...], 1.0),
                                    approx=False)                 # [tn, 1]
                out_ref[...] = out_ref[...] * inv

    return kernel


@functools.partial(jax.jit, static_argnames=("num_nodes", "agg_method"))
def aggregate_all_nodes(node_ids, messages, *, num_nodes, agg_method="mean"):
    """Dense aggregation for ALL ids in [0, num_nodes).

    Returns agg [num_nodes, message_dim]; rows whose id received no message
    are zero.  node_ids outside [0, num_nodes) are ignored.
    """
    num_msgs, msg_dim = messages.shape

    # ---- per-generation VMEM budget ----------------------------------------
    vmem_cap = _vmem_capacity_bytes()
    vmem_limit = min(int(vmem_cap * 0.80), 100 * 1024 * 1024)
    vmem_budget = int(vmem_limit * 0.80)

    # ---- tile plan ----------------------------------------------------------
    tn, tm, d_pad = _plan_tiles(num_nodes, num_msgs, msg_dim, vmem_budget)
    n_pad = _round_up(num_nodes, tn)
    m_pad = _round_up(num_msgs, tm)
    num_n_tiles = n_pad // tn
    num_m_tiles = m_pad // tm

    ids = node_ids.astype(jnp.int32)

    # ids: pad with -1 (never matches any node row).
    if m_pad == num_msgs:
        ids_in = ids.reshape(1, m_pad)
    else:
        ids_in = jnp.full((1, m_pad), -1, jnp.int32).at[0, :num_msgs].set(ids)

    # messages: only materialize a padded HBM copy when actually required.
    if m_pad == num_msgs and d_pad == msg_dim and messages.dtype == jnp.float32:
        msg_in = messages
    else:
        msg_in = jnp.zeros((m_pad, d_pad), jnp.float32)
        msg_in = msg_in.at[:num_msgs, :msg_dim].set(
            messages.astype(jnp.float32))

    # ---- per-(n,m)-block histogram (flat 1-D -> cheap SMEM layout) ----------
    valid = jnp.logical_and(ids >= 0, ids < num_nodes)
    n_tile = jnp.clip(ids // tn, 0, num_n_tiles - 1)
    m_tile = jnp.arange(num_msgs, dtype=jnp.int32) // tm
    flat = n_tile * num_m_tiles + m_tile
    tile_counts = jnp.zeros((num_n_tiles * num_m_tiles,), jnp.int32)
    tile_counts = tile_counts.at[flat].add(valid.astype(jnp.int32))

    kernel = _make_agg_kernel(tn, tm, agg_method)
    scratch_shapes = ([pltpu.VMEM((tn, 1), jnp.float32)]
                      if agg_method == "mean" else [])

    out = pl.pallas_call(
        kernel,
        out_shape=jax.ShapeDtypeStruct((n_pad, d_pad), jnp.float32),
        grid_spec=pltpu.PrefetchScalarGridSpec(
            num_scalar_prefetch=1,
            grid=(num_n_tiles, num_m_tiles),      # N parallel, M reduction last
            in_specs=[
                pl.BlockSpec((1, tm), lambda n, m, tc: (0, m)),
                pl.BlockSpec((tm, d_pad), lambda n, m, tc: (m, 0)),
            ],
            out_specs=pl.BlockSpec((tn, d_pad), lambda n, m, tc: (n, 0)),
            scratch_shapes=scratch_shapes,
        ),
        compiler_params=pltpu.CompilerParams(
            dimension_semantics=("parallel", "arbitrary"),
            vmem_limit_bytes=vmem_limit,
        ),
    )(tile_counts, ids_in, msg_in)

    return out[:num_nodes, :msg_dim]


def message_aggregator_forward(node_ids, messages, *, num_nodes=None,
                               agg_method="mean"):
    """Full MessageAggregator.forward equivalent.

    Returns (unique_node_ids, agg_messages[num_unique, message_dim]) matching
    the PyTorch module.  The unique-id extraction has a data-dependent output
    shape and stays in plain JAX; the aggregation hot path is the Pallas kernel.
    """
    node_ids = jnp.asarray(node_ids)
    messages = jnp.asarray(messages)

    if messages.shape[0] == 0:
        uniq = jnp.unique(node_ids)
        return uniq, jnp.empty((0, messages.shape[1]), messages.dtype)

    # Ensure the dense id range covers every id so out-of-range ids can never
    # silently alias another node's row.
    # TODO(synk): negative node ids have no dense-kernel equivalent here.
    max_id = int(jnp.max(node_ids))
    if num_nodes is None or num_nodes <= max_id:
        num_nodes = max_id + 1

    agg_all = aggregate_all_nodes(
        node_ids, messages, num_nodes=num_nodes, agg_method=agg_method)
    unique_node_ids = jnp.unique(node_ids)   # dynamic shape — outside jit
    agg_messages = agg_all[unique_node_ids]
    return unique_node_ids, agg_messages


def _reference(node_ids, messages, agg_method):
    """Pure-numpy reference mirroring the PyTorch loop."""
    import numpy as np
    node_ids = np.asarray(node_ids)
    messages = np.asarray(messages)
    uniq = np.unique(node_ids)
    rows = []
    for nid in uniq:
        nm = messages[node_ids == nid]
        rows.append(nm.mean(axis=0) if agg_method == "mean" else nm[-1])
    return uniq, (np.stack(rows) if rows
                  else np.empty((0, messages.shape[1]), np.float32))


if __name__ == "__main__":
    key = jax.random.PRNGKey(0)
    k_ids, k_msg = jax.random.split(key)

    num_messages = 8       # "seq"
    message_dim = 32       # "hidden"
    num_nodes = 16         # id range for the dense segment reduction

    node_ids = jax.random.randint(
        k_ids, (num_messages,), minval=0, maxval=num_nodes, dtype=jnp.int32)
    messages = jax.random.normal(
        k_msg, (num_messages, message_dim), dtype=jnp.float32)

    for agg_method in ("mean", "last"):
        uniq, agg = message_aggregator_forward(
            node_ids, messages, num_nodes=num_nodes, agg_method=agg_method)
        agg = jax.block_until_ready(agg)

        ref_uniq, ref_agg = _reference(node_ids, messages, agg_method)
        assert (jnp.asarray(ref_uniq) == uniq).all()
        assert jnp.allclose(agg, jnp.asarray(ref_agg), atol=1e-5, rtol=1e-5), \
            f"mismatch for agg_method={agg_method}"

    print("KERNEL_OK")
</pallas_src>

<mosaic_0001>
module attributes {stable_mosaic.version = 11 : i64} {
  func.func private @main(%arg0: i32) attributes {dimension_semantics = [#tpu.dimension_semantics<core_parallel>], iteration_bounds = array<i64: 2>, tpu.core_type = #tpu.core_type<sc_scalar_subcore>, window_params = []} {
    return
  }
}

module attributes {stable_mosaic.version = 11 : i64} {
  func.func private @main(%arg0: i32) attributes {dimension_semantics = [#tpu.dimension_semantics<core_parallel>], iteration_bounds = array<i64: 2>, tpu.core_type = #tpu.core_type<sc_scalar_subcore>, window_params = []} {
    return
  }
}

module attributes {stable_mosaic.version = 11 : i64} {
  func.func @kernel(%arg0: i32, %arg1: i32, %arg2: memref<1xi32, #tpu.memory_space<smem>>, %arg3: memref<1x128xi32, #tpu.memory_space<vmem>>, %arg4: memref<128x128xf32, #tpu.memory_space<vmem>>, %arg5: memref<16x128xf32, #tpu.memory_space<vmem>>, %arg6: memref<16x1xf32, #tpu.memory_space<vmem>>) attributes {dimension_semantics = [#tpu.dimension_semantics<parallel>, #tpu.dimension_semantics<arbitrary>], iteration_bounds = array<i64: 1, 1>, scalar_prefetch = 1 : i64, scratch_operands = 1 : i64, tpu.core_type = #tpu.core_type<tc>, window_params = [{transform_indices = @transform_0, window_bounds = array<i64: 1, 128>}, {transform_indices = @transform_1, window_bounds = array<i64: 128, 128>}, {transform_indices = @transform_2, window_bounds = array<i64: 16, 128>}]} {
    %c1_i32 = arith.constant 1 : i32
    %0 = arith.muli %arg0, %c1_i32 : i32
    %1 = arith.addi %0, %arg1 : i32
    %2 = arith.index_cast %1 : i32 to index
    %3 = memref.load %arg2[%2] : memref<1xi32, #tpu.memory_space<smem>>
    %c0_i32 = arith.constant 0 : i32
    %4 = arith.cmpi sgt, %3, %c0_i32 : i32
    %c0_i32_0 = arith.constant 0 : i32
    %5 = arith.cmpi eq, %arg1, %c0_i32_0 : i32
    %6 = arith.extui %5 : i1 to i32
    %c0_i32_1 = arith.constant 0 : i32
    %7 = arith.cmpi ne, %6, %c0_i32_1 : i32
    scf.if %7 {
      %cst = arith.constant 0.000000e+00 : f32
      %13 = vector.broadcast %cst : f32 to vector<16x128xf32>
      %c0 = arith.constant 0 : index
      %c0_5 = arith.constant 0 : index
      %14 = vector.load %arg5[%c0, %c0_5] : memref<16x128xf32, #tpu.memory_space<vmem>>, vector<16x128xf32>
      tpu.vector_store %arg5[%c0, %c0_5], %13 {strides = array<i32>} : memref<16x128xf32, #tpu.memory_space<vmem>>, vector<16x128xf32>,
      %cst_6 = arith.constant 0.000000e+00 : f32
      %15 = vector.broadcast %cst_6 : f32 to vector<16x1xf32>
      %c0_7 = arith.constant 0 : index
      %c0_8 = arith.constant 0 : index
      %16 = vector.load %arg6[%c0_7, %c0_8] : memref<16x1xf32, #tpu.memory_space<vmem>>, vector<16x1xf32>
      tpu.vector_store %arg6[%c0_7, %c0_8], %15 {strides = array<i32>} : memref<16x1xf32, #tpu.memory_space<vmem>>, vector<16x1xf32>,
    } else {
    }
    %8 = arith.extui %4 : i1 to i32
    %c0_i32_2 = arith.constant 0 : i32
    %9 = arith.cmpi ne, %8, %c0_i32_2 : i32
    scf.if %9 {
      %c0 = arith.constant 0 : index
      %c0_5 = arith.constant 0 : index
      %13 = vector.load %arg3[%c0, %c0_5] : memref<1x128xi32, #tpu.memory_space<vmem>>, vector<1x128xi32>
      %c0_6 = arith.constant 0 : index
      %c0_7 = arith.constant 0 : index
      %14 = vector.load %arg4[%c0_6, %c0_7] : memref<128x128xf32, #tpu.memory_space<vmem>>, vector<128x128xf32>
      %c16_i32 = arith.constant 16 : i32
      %15 = arith.muli %arg0, %c16_i32 : i32
      %16 = tpu.iota {dimensions = array<i32: 0>} : vector<16x128xi32>
      %17 = vector.broadcast %15 : i32 to vector<16x128xi32>
      %18 = arith.addi %17, %16 : vector<16x128xi32>
      %19 = vector.broadcast %13 : vector<1x128xi32> to vector<16x128xi32>
      %20 = arith.cmpi eq, %19, %18 : vector<16x128xi32>
      %21 = arith.extui %20 : vector<16x128xi1> to vector<16x128xi32>
      %22 = arith.sitofp %21 : vector<16x128xi32> to vector<16x128xf32>
      %c0_8 = arith.constant 0 : index
      %c0_9 = arith.constant 0 : index
      %23 = vector.load %arg5[%c0_8, %c0_9] : memref<16x128xf32, #tpu.memory_space<vmem>>, vector<16x128xf32>
      %cst = arith.constant dense<0.000000e+00> : vector<16x128xf32>
      %24 = tpu.matmul %22, %14, %cst {dimension_numbers = #tpu.dot_dimension_numbers<[1], [0], [0], [1], [0, 0, 1, 1], [], []>} : vector<16x128xf32>, vector<128x128xf32>, vector<16x128xf32> -> vector<16x128xf32>
      %25 = arith.addf %23, %24 : vector<16x128xf32>
      %c0_10 = arith.constant 0 : index
      %c0_11 = arith.constant 0 : index
      %26 = vector.load %arg5[%c0_10, %c0_11] : memref<16x128xf32, #tpu.memory_space<vmem>>, vector<16x128xf32>
      tpu.vector_store %arg5[%c0_10, %c0_11], %25 {strides = array<i32>} : memref<16x128xf32, #tpu.memory_space<vmem>>, vector<16x128xf32>,
      %c0_12 = arith.constant 0 : index
      %c0_13 = arith.constant 0 : index
      %27 = vector.load %arg6[%c0_12, %c0_13] : memref<16x1xf32, #tpu.memory_space<vmem>>, vector<16x1xf32>
      %cst_14 = arith.constant dense<0.000000e+00> : vector<16xf32>
      %28 = vector.multi_reduction <add>, %22, %cst_14 [1] : vector<16x128xf32> to vector<16xf32>
      %29 = vector.shape_cast %28 : vector<16xf32> to vector<16x1xf32>
      %30 = arith.addf %27, %29 : vector<16x1xf32>
      %c0_15 = arith.constant 0 : index
      %c0_16 = arith.constant 0 : index
      %31 = vector.load %arg6[%c0_15, %c0_16] : memref<16x1xf32, #tpu.memory_space<vmem>>, vector<16x1xf32>
      tpu.vector_store %arg6[%c0_15, %c0_16], %30 {strides = array<i32>} : memref<16x1xf32, #tpu.memory_space<vmem>>, vector<16x1xf32>,
    } else {
    }
    %c0_i32_3 = arith.constant 0 : i32
    %10 = arith.cmpi eq, %arg1, %c0_i32_3 : i32
    %11 = arith.extui %10 : i1 to i32
    %c0_i32_4 = arith.constant 0 : i32
    %12 = arith.cmpi ne, %11, %c0_i32_4 : i32
    scf.if %12 {
      %c0 = arith.constant 0 : index
      %c0_5 = arith.constant 0 : index
      %13 = vector.load %arg6[%c0, %c0_5] : memref<16x1xf32, #tpu.memory_space<vmem>>, vector<16x1xf32>
      %cst = arith.constant 1.000000e+00 : f32
      %14 = vector.broadcast %cst : f32 to vector<16x1xf32>
      %15 = arith.maximumf %13, %14 : vector<16x1xf32>
      %16 = tpu.reciprocal %15 : vector<16x1xf32> -> vector<16x1xf32>
      %c0_6 = arith.constant 0 : index
      %c0_7 = arith.constant 0 : index
      %17 = vector.load %arg5[%c0_6, %c0_7] : memref<16x128xf32, #tpu.memory_space<vmem>>, vector<16x128xf32>
      %18 = vector.broadcast %16 : vector<16x1xf32> to vector<16x128xf32>
      %19 = arith.mulf %17, %18 : vector<16x128xf32>
      %c0_8 = arith.constant 0 : index
      %c0_9 = arith.constant 0 : index
      %20 = vector.load %arg5[%c0_8, %c0_9] : memref<16x128xf32, #tpu.memory_space<vmem>>, vector<16x128xf32>
      tpu.vector_store %arg5[%c0_8, %c0_9], %19 {strides = array<i32>} : memref<16x128xf32, #tpu.memory_space<vmem>>, vector<16x128xf32>,
    } else {
    }
    return
  }
  func.func @transform_0(%arg0: i32, %arg1: i32, %arg2: memref<1xi32, #tpu.memory_space<smem>>) -> (i32, i32) {
    %c0_i32 = arith.constant 0 : i32
    %c0_i32_0 = arith.constant 0 : i32
    return %c0_i32, %arg1 : i32, i32
  }
  func.func @transform_1(%arg0: i32, %arg1: i32, %arg2: memref<1xi32, #tpu.memory_space<smem>>) -> (i32, i32) {
    %c0_i32 = arith.constant 0 : i32
    %c0_i32_0 = arith.constant 0 : i32
    return %arg1, %c0_i32 : i32, i32
  }
  func.func @transform_2(%arg0: i32, %arg1: i32, %arg2: memref<1xi32, #tpu.memory_space<smem>>) -> (i32, i32) {
    %c0_i32 = arith.constant 0 : i32
    %c0_i32_0 = arith.constant 0 : i32
    return %arg0, %c0_i32 : i32, i32
  }
}

</mosaic_0001>

<bundles_post_ra>
// kernel: aggregate_all_nodes.1
= control target key start
LH: loop header
LB: loop body
LE: loop exit
PB: predicated region body
PF: predicated region fallthrough
CT: control target
= control target key end

     0   :  { %9 = vsyncpa [#allocation6], 0  ;;  %vm23_vm0 = vcmask 7168   ;;  %v289_v0 = vmov 0.0   ;;  %s379_s0 = inlined_call_operand.<no memory space> [shape: s32[1], index: 0, kind: input, shape index: {}]   ;;  %s380_s1 = inlined_call_operand.vmem [shape: s32[1,128], index: 1, kind: input, shape index: {}]   ;;  %s381_s2 = inlined_call_operand.vmem [shape: f32[128,128], index: 2, kind: input, shape index: {}]   ;;  %s382_s3 = inlined_call_operand.hbm [shape: f32[16,128], index: 3, kind: output, shape index: {}]  }
   0x1   :  { %21 = vst [vmem:[#allocation5] sm:$0xff] %v289_v0  ;;  %22 = vst [vmem:[#allocation5 + $0x8] sm:$0xff] %v289_v0  ;;  %p196_p0 = scmp.le.s32.totalorder %s379_s0, 0 }
   0x2   :  { %24 = vst.msk [vmem:[#allocation2] sm:$0xff] %vm23_vm0, %v289_v0  ;;  %25 = vst.msk [vmem:[#allocation2 + $0x8] sm:$0xff] %vm23_vm0, %v289_v0 }
   0x3   :  { %28 = sbr.rel (%p196_p0) target bundleno = 239 (0xef), region = 17 }
   0x8   :  { %v45_v1 = vld [vmem:[%s381_s2 + $0x78] sm:$0xff]  ;;  %v44_v2 = vld [vmem:[%s381_s2 + $0x70] sm:$0xff]  ;;  %v47_v3 = vlaneseq  ;;  %v43_v4 = vld [vmem:[%s381_s2 + $0x68] sm:$0xff]  ;;  %v290_v10 = vmov 1.0   ;;  %v291_v11 = vmov 0.0  }
   0x9   :  { %220 = vmatprep.subr.mxu0 %v45_v1  ;;  %v42_v6 = vld [vmem:[%s381_s2 + $0x60] sm:$0xff]  ;;  %v41_v9 = vld [vmem:[%s381_s2 + $0x58] sm:$0xff]  ;;  %v40_v13 = vld [vmem:[%s381_s2 + $0x50] sm:$0xff] }
   0xa   :  { %221 = vmatpush3.msra.mxu0 %v45_v1  ;;  %v48_v5 = vshrl.u32 %v47_v3, 7  ;;  %v197_v8 = vld [vmem:[%s380_s1] ss:$0 sm:$0xff]  ;;  %v39_v15 = vld [vmem:[%s381_s2 + $0x48] sm:$0xff]  ;;  %v37_v17 = vld [vmem:[%s381_s2 + $0x38] sm:$0xff] }
   0xb   :  { %222 = vmatprep.subr.mxu0 %v44_v2  ;;  %v38_v16 = vld [vmem:[%s381_s2 + $0x40] sm:$0xff]  ;;  %v36_v18 = vld [vmem:[%s381_s2 + $0x30] sm:$0xff]  ;;  %v35_v19 = vld [vmem:[%s381_s2 + $0x28] sm:$0xff] }
   0xc   :  { %223 = vmatpush3.msra.mxu0 %v44_v2  ;;  %v49_v7 = vadd.s32 8, %v48_v5  ;;  %vm57_vm1 = vcmp.eq.s32.totalorder %v197_v8, %v48_v5  ;;  %v34_v20 = vld [vmem:[%s381_s2 + $0x20] sm:$0xff]  ;;  %v33_v21 = vld [vmem:[%s381_s2 + $0x18] sm:$0xff]  ;;  %v32_v22 = vld [vmem:[%s381_s2 + $0x10] sm:$0xff] }
   0xd   :  { %224 = vmatprep.subr.mxu0 %v43_v4  ;;  %252 = vmatprep.mubr.msk.f32.mxu0 %vm57_vm1, %v290_v10  ;;  %v198_v12 = vsel %vm57_vm1, 1.0, %v291_v11  ;;  %v31_v23 = vld [vmem:[%s381_s2 + $0x8] sm:$0xff]  ;;  %v30_v24 = vld [vmem:[%s381_s2] sm:$0xff]  ;;  %v64_v31 = vld [vmem:[#allocation5 + $0x8] sm:$0xff] }
   0xe   :  { %225 = vmatpush3.msra.mxu0 %v43_v4  ;;  %vm58_vm2 = vcmp.eq.s32.totalorder %v197_v8, %v49_v7  ;;  %146 = vadd.xlane.f32.xlu0 %v198_v12  ;;  %v144_v25 = vld [vmem:[#allocation2] sm:$0xff]  ;;  %v145_v28 = vld [vmem:[#allocation2 + $0x8] sm:$0xff]  ;;  %v63_v33 = vld [vmem:[#allocation5] sm:$0xff] }
   0xf   :  { %226 = vmatprep.subr.mxu0 %v42_v6  ;;  %v199_v14 = vsel %vm58_vm2, 1.0, %v291_v11 }
  0x10   :  { %227 = vmatpush3.msra.mxu0 %v42_v6 }
  0x11   :  { %228 = vmatprep.subr.mxu0 %v41_v9 }
  0x12   :  { %229 = vmatpush3.msra.mxu0 %v41_v9  ;;  %148 = vadd.xlane.f32.xlu0 %v199_v14 }
  0x13   :  { %230 = vmatprep.subr.mxu0 %v40_v13 }
  0x14   :  { %231 = vmatpush3.msra.mxu0 %v40_v13 }
  0x15   :  { %232 = vmatprep.subr.mxu0 %v39_v15 }
  0x16   :  { %233 = vmatpush3.msra.mxu0 %v39_v15 }
  0x17   :  { %234 = vmatprep.subr.mxu0 %v38_v16 }
  0x18   :  { %235 = vmatpush3.msra.mxu0 %v38_v16 }
  0x19   :  { %236 = vmatprep.subr.mxu0 %v37_v17 }
  0x1a   :  { %237 = vmatpush3.msra.mxu0 %v37_v17 }
  0x1b   :  { %238 = vmatprep.subr.mxu0 %v36_v18 }
  0x1c   :  { %239 = vmatpush3.msra.mxu0 %v36_v18 }
  0x1d   :  { %240 = vmatprep.subr.mxu0 %v35_v19 }
  0x1e   :  { %241 = vmatpush3.msra.mxu0 %v35_v19 }
  0x1f   :  { %242 = vmatprep.subr.mxu0 %v34_v20 }
  0x20   :  { %243 = vmatpush3.msra.mxu0 %v34_v20 }
  0x21   :  { %244 = vmatprep.subr.mxu0 %v33_v21 }
  0x22   :  { %245 = vmatpush3.msra.mxu0 %v33_v21 }
  0x23   :  { %246 = vmatprep.subr.mxu0 %v32_v22 }
  0x24   :  { %247 = vmatpush3.msra.mxu0 %v32_v22 }
  0x25   :  { %248 = vmatprep.subr.mxu0 %v31_v23 }
  0x26   :  { %249 = vmatpush3.msra.mxu0 %v31_v23 }
  0x27   :  { %250 = vmatprep.subr.mxu0 %v30_v24 }
  0x28   :  { %251 = vmatpush3.msra.mxu0 %v30_v24 }
  0x29   :  { %253 = vmatmul.mubr.msk.f32.vlgmr.msra.gmra.mxu0 %vm58_vm2, %v290_v10 }
  0x97   :  { %v147_v26 = vpop.xlane.xlu0 %146 }
  0x98   :  { %v150_v27 = vadd.f32 %v147_v26, %v144_v25 }
  0x9a   :  { %153 = vst.msk [vmem:[#allocation2] sm:$0xff] %vm23_vm0, %v150_v27 }
  0x9b   :  { %v149_v29 = vpop.xlane.xlu0 %148 }
  0x9c   :  { %v151_v30 = vadd.f32 %v149_v29, %v145_v28 }
  0x9e   :  { %154 = vst.msk [vmem:[#allocation2 + $0x8] sm:$0xff] %vm23_vm0, %v151_v30 }
  0xe9   :  { %v254_v32 = vpop.f32.mrf.mxu0 }
  0xea   :  { %v141_v34 = vadd.f32 %v254_v32, %v64_v31 }
  0xeb   :  { %v131_v35 = vpop.f32.mrf.mxu0 }
  0xec   :  { %143 = vst [vmem:[#allocation5 + $0x8] sm:$0xff] %v141_v34  ;;  %v140_v36 = vadd.f32 %v131_v35, %v63_v33 }
  0xee   :  { %142 = vst [vmem:[#allocation5] sm:$0xff] %v140_v36 }
  0xef PF:  { %v292_v39 = vmov 0   ;;  %s293_s2 = smov [#allocation5]  }
  0xf0   :  { %v158_v37 = vld [vmem:[#allocation2] sm:$0xff]  ;;  %v159_v38 = vld [vmem:[#allocation2 + $0x8] sm:$0xff]  ;;  %262 = vset.pattern.permute.xlu0 %v292_v39  ;;  %s185_s19 = sshll.u32 %s293_s2, 4  ;;  %s186_s19 = int_to_ptr.vmem [resolvable:$true] %s185_s19 }
  0xf1   :  { %v160_v40 = vmax.f32 %v158_v37, 1.0  ;;  %v161_v41 = vmax.f32 %v159_v38, 1.0  ;;  %s267_s0 = scalar_lea.vmem %s186_s19, 256  ;;  %p272_p2 = scmp.lt.s32.totalorder %s186_s19, %s186_s19 }
  0xf2   :  { %p268_p1 = scmp.ne.s32.totalorder %s186_s19, %s267_s0  ;;  %p273_p3 = scmp.lt.s32.totalorder %s267_s0, %s267_s0 }
  0xf3   :  { %263 = vrcp.f32 %v160_v40  ;;  %v165_v47 = vld [vmem:[#allocation5 + $0x8] sm:$0xff] }
  0xf4   :  { %265 = vrcp.f32 %v161_v41  ;;  %p274_p4 = por %p273_p3, %p272_p2 }
  0xf5   :  { %v164_v44 = vld [vmem:[#allocation5] sm:$0xff] }
  0xf6   :  { %p275_p5 = pnand %p274_p4, %p268_p1 }
 0x100   :  { %v264_v42 = vpop.eup %263 }
 0x101   :  { %168 = vperm.xlu0 %262, %v264_v42   ;;  %v266_v43 = vpop.eup %265 }
 0x105   :  { %173 = vperm.xlu0 %262, %v266_v43  }
 0x17c   :  { %v169_v45 = vpop.permute.xlu0 %168 }
 0x17d   :  { %v176_v46 = vmul.f32 %v169_v45, %v164_v44 }
 0x17f   :  { %178 = vst [vmem:[#allocation5] sm:$0xff] %v176_v46 }
 0x180   :  { %v174_v48 = vpop.permute.xlu0 %173 }
 0x181   :  { %v177_v49 = vmul.f32 %v174_v48, %v165_v47 }
 0x183   :  { %179 = vst [vmem:[#allocation5 + $0x8] sm:$0xff] %v177_v49 }
 0x184   :  { %278 = shalt.err (!%p275_p5)
}
 0x185   :  { %s294_s20 = smov 128   ;;  %s295_s21 = smov 8  }
 0x186   :  { %191 = dma.vmem_to_hbm [thread:$0]  %s186_s19, 256, %s382_s3, [#allocation6], %s294_s20, %s294_s20, %s295_s21  }
 0x187   :  { %287 = dma.done.wait [#allocation6], 256  }
 0x188   :  { %288 = vsyncadd [#allocation6], 4294967040 }
 0x189   :  { %195 = vsyncpa [#allocation6], 1 }

</bundles_post_ra>
